<compile_context>
chip_gen: v7x
topology: tpu7x:2x2x1
jax: 0.10.0
libtpu: 0.0.40
codegen_flags: <defaults>
</compile_context>

<pallas_src>
import functools
from typing import NamedTuple

import jax
import jax.numpy as jnp
from jax.experimental import pallas as pl
from jax.experimental.pallas import tpu as pltpu


def _round_up(n, m):
    return ((n + m - 1) // m) * m


class CDAELayout(NamedTuple):
    """Static lane layout of the packed 128-wide slabs (hashable -> jit-static)."""
    x_dim: int
    y_dim: int
    ne_dim: int
    latent_dim: int
    hidden_dim: int
    out_dim: int
    slab: int     # width of the packed input / latent slab (multiple of 128)
    out_w: int    # width of the padded decoder-output slab (multiple of 128)
    ne0: int      # noise-embedding lanes   [ne0, ne0+ne_dim)
    l0: int       # latent lanes            [l0,  l0+latent_dim)
    x0: int       # x lanes                 [x0,  x0+x_dim)
    y0: int       # y lanes                 [y0,  y0+y_dim)


def cdae_kernel(s_ref, w_e1_ref, b_e1_ref, w_e2_ref, b_e2_ref,
                w_d1_ref, b_d1_ref, w_d2_ref, b_d2_ref, out_ref):
    """One batch tile: 4 lane-dense MXU matmuls + f32 VPU bias/ReLU.

    The concat layers and the second noise-embedding linear are pre-folded into the
    weight slabs; "concatenation" is a disjoint-lane add of zero-padded slabs.
    """
    slab = s_ref.shape[-1]
    out_w = out_ref.shape[-1] - slab

    # (TB, slab): h_ne at [ne0:), x at [x0:), y at [y0:), latent lanes exactly 0.
    s = s_ref[...]

    # --- encoder:  relu(concat([x, y, ne]) @ W_e1 + b_e1)  as one K=slab dot ---
    h1 = jnp.maximum(
        jnp.dot(s, w_e1_ref[...], preferred_element_type=jnp.float32)
        + b_e1_ref[...], 0.0)                                            # (TB, H) f32
    latent = jnp.maximum(
        jnp.dot(h1.astype(w_e2_ref.dtype), w_e2_ref[...],
                preferred_element_type=jnp.float32)
        + b_e2_ref[...], 0.0)                                            # (TB, slab) f32

    # --- decoder:  concat([latent, x, ne]) folded as a disjoint-lane add
    #     (y lanes of `s` multiply zero rows of w_d1). ---
    dec_in = s + latent.astype(s.dtype)                                  # (TB, slab)
    h2 = jnp.maximum(
        jnp.dot(dec_in, w_d1_ref[...], preferred_element_type=jnp.float32)
        + b_d1_ref[...], 0.0)                                            # (TB, H) f32
    out = jnp.dot(h2.astype(w_d2_ref.dtype), w_d2_ref[...],
                  preferred_element_type=jnp.float32) + b_d2_ref[...]    # (TB, out_w)

    # Single merged, lane-dense output slab: [ decoder out | latent slab ].
    out_ref[:, :out_w] = out
    out_ref[:, out_w:] = latent


def prepare_params(params, *, x_dim, y_dim, latent_dim, mxu_dtype=jnp.bfloat16):
    """One-time: fold concats + the 2nd noise-embed linear into lane-packed weight slabs.

    Returns (prepped_params, layout).  Call once; reuse the result for every forward.
    Only the MXU weight operands are cast to `mxu_dtype`; biases stay f32.
    """
    ne_dim = params["w_ne1"].shape[1]
    hidden = params["w_e1"].shape[1]
    out_dim = x_dim + y_dim

    slab = _round_up(ne_dim + latent_dim + x_dim + y_dim, 128)
    out_w = _round_up(out_dim, 128)
    ne0, l0 = 0, ne_dim
    x0 = ne_dim + latent_dim
    y0 = x0 + x_dim
    layout = CDAELayout(x_dim, y_dim, ne_dim, latent_dim, hidden, out_dim,
                        slab, out_w, ne0, l0, x0, y0)

    f32 = jnp.float32
    z = lambda r, c: jnp.zeros((r, c), f32)

    # First noise-embedding layer stays unfolded; it runs (cheaply) in the jitted wrapper.
    w_ne1 = params["w_ne1"].astype(f32)               # (1, NE)
    b_ne1 = params["b_ne1"].astype(f32)               # (1, NE)
    # Second noise-embedding layer is folded into w_e1 / w_d1 below (exact: ReLU precedes it).
    w_ne2 = params["w_ne2"].astype(f32)               # (NE, NE)
    b_ne2 = params["b_ne2"].astype(f32)               # (1, NE)

    # encoder layer 1: rows permuted to slab layout [ne | latent(0) | x | y], ne rows folded
    we1 = params["w_e1"].astype(f32)                  # (x+y+ne, H), row order x, y, ne
    we1_ne = we1[x_dim + y_dim:]                      # (NE, H)
    w_e1 = (z(slab, hidden)
            .at[x0:x0 + x_dim].set(we1[0:x_dim])
            .at[y0:y0 + y_dim].set(we1[x_dim:x_dim + y_dim])
            .at[ne0:ne0 + ne_dim].set(w_ne2 @ we1_ne))
    b_e1 = params["b_e1"].astype(f32) + b_ne2 @ we1_ne

    # encoder layer 2: latent emitted at lanes [l0:l0+L) of a lane-dense slab
    w_e2 = z(hidden, slab).at[:, l0:l0 + latent_dim].set(params["w_e2"].astype(f32))
    b_e2 = z(1, slab).at[:, l0:l0 + latent_dim].set(params["b_e2"].astype(f32))

    # decoder layer 1: rows [latent | x | ne(folded)]; y lanes hit zero rows
    wd1 = params["w_d1"].astype(f32)                  # (L+x+ne, H), row order latent, x, ne
    wd1_ne = wd1[latent_dim + x_dim:]                 # (NE, H)
    w_d1 = (z(slab, hidden)
            .at[l0:l0 + latent_dim].set(wd1[0:latent_dim])
            .at[x0:x0 + x_dim].set(wd1[latent_dim:latent_dim + x_dim])
            .at[ne0:ne0 + ne_dim].set(w_ne2 @ wd1_ne))
    b_d1 = params["b_d1"].astype(f32) + b_ne2 @ wd1_ne

    # decoder layer 2: output padded to a lane-dense width
    w_d2 = z(hidden, out_w).at[:, 0:out_dim].set(params["w_d2"].astype(f32))
    b_d2 = z(1, out_w).at[:, 0:out_dim].set(params["b_d2"].astype(f32))

    prepped = dict(w_ne1=w_ne1, b_ne1=b_ne1,
                   w_e1=w_e1.astype(mxu_dtype), b_e1=b_e1,
                   w_e2=w_e2.astype(mxu_dtype), b_e2=b_e2,
                   w_d1=w_d1.astype(mxu_dtype), b_d1=b_d1,
                   w_d2=w_d2.astype(mxu_dtype), b_d2=b_d2)
    return prepped, layout


def _pick_batch_tile(B, max_tile=1024):
    """Batch tile: multiple of 8; >=2 grid steps whenever B >= 16 so the 'parallel' axis
    feeds both v7x TensorCores; padding kept small (ceil(B/n_tiles)); capped at `max_tile`
    rows so the per-tile working set stays a few MiB (well inside v7x's 64 MiB VMEM)."""
    n_tiles = max(1, -(-B // max_tile))
    if B >= 16:
        n_tiles = max(n_tiles, 2)
    return _round_up(-(-B // n_tiles), 8)


@functools.partial(jax.jit, static_argnames=("layout", "max_batch_tile"))
def cdae_forward(x, y_noisy, noise_level, prepped, *, layout, max_batch_tile=1024):
    """Whole forward in one pallas_call, batch-tiled over a parallel 1-D grid."""
    B = x.shape[0]
    tb = _pick_batch_tile(B, max_batch_tile)
    B_pad = _round_up(B, tb)
    act_dtype = prepped["w_e1"].dtype          # MXU operand dtype (bf16 in production)

    # First noise-embedding layer (tiny 1->NE affine + ReLU) runs here; its output lands
    # directly in the ne lanes of the input slab (the 2nd linear is folded into w_e1/w_d1).
    h_ne = jnp.maximum(
        noise_level.astype(jnp.float32) @ prepped["w_ne1"] + prepped["b_ne1"], 0.0)

    # Pack x / y / h_ne into the lane-dense input slab at their static lane offsets
    # (XLA-side, cheap under jit); pad the batch to a multiple of the batch tile.
    s = jnp.zeros((B_pad, layout.slab), act_dtype)
    s = s.at[:B, layout.x0:layout.x0 + layout.x_dim].set(x.astype(act_dtype))
    s = s.at[:B, layout.y0:layout.y0 + layout.y_dim].set(y_noisy.astype(act_dtype))
    s = s.at[:B, layout.ne0:layout.ne0 + layout.ne_dim].set(h_ne.astype(act_dtype))

    weight_names = ("w_e1", "b_e1", "w_e2", "b_e2", "w_d1", "b_d1", "w_d2", "b_d2")
    weights = [prepped[k] for k in weight_names]

    merged_w = layout.out_w + layout.slab
    merged = pl.pallas_call(
        cdae_kernel,
        out_shape=jax.ShapeDtypeStruct((B_pad, merged_w), jnp.float32),
        grid=(B_pad // tb,),
        in_specs=[pl.BlockSpec((tb, layout.slab), lambda i: (i, 0))]
                 # full block + constant index map -> weights stay VMEM-resident
                 + [pl.BlockSpec(w.shape, lambda i: (0, 0)) for w in weights],
        out_specs=pl.BlockSpec((tb, merged_w), lambda i: (i, 0)),
        compiler_params=pltpu.CompilerParams(dimension_semantics=("parallel",)),
    )(s, *weights)

    # Slice logical widths back out (padded batch rows hold bias-only garbage -> dropped).
    out = merged[:B, :layout.out_dim]
    latent = merged[:B, layout.out_w + layout.l0:
                        layout.out_w + layout.l0 + layout.latent_dim]
    return out, latent


def cdae_reference(x, y_noisy, noise_level, params):
    """Plain-JAX reference mirroring the PyTorch forward (real concats, no folding)."""
    h_ne = jnp.maximum(noise_level @ params["w_ne1"] + params["b_ne1"], 0.0)
    ne = h_ne @ params["w_ne2"] + params["b_ne2"]
    inp = jnp.concatenate([x, y_noisy, ne], axis=1)
    h1 = jnp.maximum(inp @ params["w_e1"] + params["b_e1"], 0.0)
    latent = jnp.maximum(h1 @ params["w_e2"] + params["b_e2"], 0.0)
    dec_inp = jnp.concatenate([latent, x, ne], axis=1)
    h2 = jnp.maximum(dec_inp @ params["w_d1"] + params["b_d1"], 0.0)
    out = h2 @ params["w_d2"] + params["b_d2"]
    return out, latent


def init_params(key, x_dim, y_dim, hidden_dim, latent_dim, ne_dim):
    """Deterministic synthetic init. Weights are (in, out); biases are (1, out)."""
    ks = jax.random.split(key, 12)

    def w(k, shape):
        return (0.1 * jax.random.normal(k, shape)).astype(jnp.float32)

    enc_in = x_dim + y_dim + ne_dim
    dec_in = latent_dim + x_dim + ne_dim
    return {
        "w_ne1": w(ks[0], (1, ne_dim)),        "b_ne1": w(ks[1], (1, ne_dim)),
        "w_ne2": w(ks[2], (ne_dim, ne_dim)),   "b_ne2": w(ks[3], (1, ne_dim)),
        "w_e1":  w(ks[4], (enc_in, hidden_dim)),     "b_e1": w(ks[5], (1, hidden_dim)),
        "w_e2":  w(ks[6], (hidden_dim, latent_dim)), "b_e2": w(ks[7], (1, latent_dim)),
        "w_d1":  w(ks[8], (dec_in, hidden_dim)),     "b_d1": w(ks[9], (1, hidden_dim)),
        "w_d2":  w(ks[10], (hidden_dim, x_dim + y_dim)),
        "b_d2":  w(ks[11], (1, x_dim + y_dim)),
    }


if __name__ == "__main__":
    B, x_dim, y_dim = 8, 12, 6
    hidden_dim, latent_dim, ne_dim = 128, 64, 16

    key = jax.random.PRNGKey(0)
    k_x, k_y, k_n, k_p = jax.random.split(key, 4)
    x = jax.random.normal(k_x, (B, x_dim), dtype=jnp.float32)
    y_noisy = jax.random.normal(k_y, (B, y_dim), dtype=jnp.float32)
    noise_level = jax.random.uniform(k_n, (B, 1), dtype=jnp.float32)
    params = init_params(k_p, x_dim, y_dim, hidden_dim, latent_dim, ne_dim)

    ref_out, ref_latent = cdae_reference(x, y_noisy, noise_level, params)

    # --- exactness check of the lane packing / concat+noise-embed folding (f32 path) ---
    prepped_f32, layout = prepare_params(params, x_dim=x_dim, y_dim=y_dim,
                                         latent_dim=latent_dim, mxu_dtype=jnp.float32)
    out32, lat32 = cdae_forward(x, y_noisy, noise_level, prepped_f32, layout=layout)
    out32, lat32 = jax.block_until_ready(out32), jax.block_until_ready(lat32)
    assert out32.shape == (B, x_dim + y_dim) and lat32.shape == (B, latent_dim)
    assert jnp.allclose(out32, ref_out, atol=1e-5, rtol=1e-5)
    assert jnp.allclose(lat32, ref_latent, atol=1e-5, rtol=1e-5)

    # --- production path: bf16 MXU operands (f32 accumulation), looser tolerance ---
    prepped_bf16, layout = prepare_params(params, x_dim=x_dim, y_dim=y_dim,
                                          latent_dim=latent_dim, mxu_dtype=jnp.bfloat16)
    out, latent = cdae_forward(x, y_noisy, noise_level, prepped_bf16, layout=layout)
    out, latent = jax.block_until_ready(out), jax.block_until_ready(latent)
    assert out.shape == (B, x_dim + y_dim) and latent.shape == (B, latent_dim)
    assert jnp.allclose(out, ref_out, atol=5e-2, rtol=5e-2)
    assert jnp.allclose(latent, ref_latent, atol=5e-2, rtol=5e-2)

    print("KERNEL_OK")
</pallas_src>

<mosaic_0001>
module attributes {stable_mosaic.version = 11 : i64} {
  func.func @cdae_kernel(%arg0: i32, %arg1: memref<8x128xf32, #tpu.memory_space<vmem>>, %arg2: memref<128x128xf32, #tpu.memory_space<vmem>>, %arg3: memref<1x128xf32, #tpu.memory_space<vmem>>, %arg4: memref<128x128xf32, #tpu.memory_space<vmem>>, %arg5: memref<1x128xf32, #tpu.memory_space<vmem>>, %arg6: memref<128x128xf32, #tpu.memory_space<vmem>>, %arg7: memref<1x128xf32, #tpu.memory_space<vmem>>, %arg8: memref<128x128xf32, #tpu.memory_space<vmem>>, %arg9: memref<1x128xf32, #tpu.memory_space<vmem>>, %arg10: memref<8x256xf32, #tpu.memory_space<vmem>>) attributes {dimension_semantics = [#tpu.dimension_semantics<parallel>], iteration_bounds = array<i64: 1>, scalar_prefetch = 0 : i64, scratch_operands = 0 : i64, tpu.core_type = #tpu.core_type<tc>, window_params = [{transform_indices = @transform_0, window_bounds = array<i64: 8, 128>}, {pipeline_mode = #tpu.pipeline_mode<synchronous>, transform_indices = @transform_1, window_bounds = array<i64: 128, 128>}, {pipeline_mode = #tpu.pipeline_mode<synchronous>, transform_indices = @transform_2, window_bounds = array<i64: 1, 128>}, {pipeline_mode = #tpu.pipeline_mode<synchronous>, transform_indices = @transform_3, window_bounds = array<i64: 128, 128>}, {pipeline_mode = #tpu.pipeline_mode<synchronous>, transform_indices = @transform_4, window_bounds = array<i64: 1, 128>}, {pipeline_mode = #tpu.pipeline_mode<synchronous>, transform_indices = @transform_5, window_bounds = array<i64: 128, 128>}, {pipeline_mode = #tpu.pipeline_mode<synchronous>, transform_indices = @transform_6, window_bounds = array<i64: 1, 128>}, {pipeline_mode = #tpu.pipeline_mode<synchronous>, transform_indices = @transform_7, window_bounds = array<i64: 128, 128>}, {pipeline_mode = #tpu.pipeline_mode<synchronous>, transform_indices = @transform_8, window_bounds = array<i64: 1, 128>}, {transform_indices = @transform_9, window_bounds = array<i64: 8, 256>}]} {
    %c0 = arith.constant 0 : index
    %c0_0 = arith.constant 0 : index
    %0 = vector.load %arg1[%c0, %c0_0] : memref<8x128xf32, #tpu.memory_space<vmem>>, vector<8x128xf32>
    %c0_1 = arith.constant 0 : index
    %c0_2 = arith.constant 0 : index
    %1 = vector.load %arg2[%c0_1, %c0_2] : memref<128x128xf32, #tpu.memory_space<vmem>>, vector<128x128xf32>
    %cst = arith.constant dense<0.000000e+00> : vector<8x128xf32>
    %2 = tpu.matmul %0, %1, %cst {dimension_numbers = #tpu.dot_dimension_numbers<[1], [0], [0], [1], [0, 0, 1, 1], [], []>} : vector<8x128xf32>, vector<128x128xf32>, vector<8x128xf32> -> vector<8x128xf32>
    %c0_3 = arith.constant 0 : index
    %c0_4 = arith.constant 0 : index
    %3 = vector.load %arg3[%c0_3, %c0_4] : memref<1x128xf32, #tpu.memory_space<vmem>>, vector<1x128xf32>
    %4 = vector.broadcast %3 : vector<1x128xf32> to vector<8x128xf32>
    %5 = arith.addf %2, %4 : vector<8x128xf32>
    %cst_5 = arith.constant 0.000000e+00 : f32
    %6 = vector.broadcast %cst_5 : f32 to vector<8x128xf32>
    %7 = arith.maximumf %5, %6 : vector<8x128xf32>
    %c0_6 = arith.constant 0 : index
    %c0_7 = arith.constant 0 : index
    %8 = vector.load %arg4[%c0_6, %c0_7] : memref<128x128xf32, #tpu.memory_space<vmem>>, vector<128x128xf32>
    %cst_8 = arith.constant dense<0.000000e+00> : vector<8x128xf32>
    %9 = tpu.matmul %7, %8, %cst_8 {dimension_numbers = #tpu.dot_dimension_numbers<[1], [0], [0], [1], [0, 0, 1, 1], [], []>} : vector<8x128xf32>, vector<128x128xf32>, vector<8x128xf32> -> vector<8x128xf32>
    %c0_9 = arith.constant 0 : index
    %c0_10 = arith.constant 0 : index
    %10 = vector.load %arg5[%c0_9, %c0_10] : memref<1x128xf32, #tpu.memory_space<vmem>>, vector<1x128xf32>
    %11 = vector.broadcast %10 : vector<1x128xf32> to vector<8x128xf32>
    %12 = arith.addf %9, %11 : vector<8x128xf32>
    %cst_11 = arith.constant 0.000000e+00 : f32
    %13 = vector.broadcast %cst_11 : f32 to vector<8x128xf32>
    %14 = arith.maximumf %12, %13 : vector<8x128xf32>
    %15 = arith.addf %0, %14 : vector<8x128xf32>
    %c0_12 = arith.constant 0 : index
    %c0_13 = arith.constant 0 : index
    %16 = vector.load %arg6[%c0_12, %c0_13] : memref<128x128xf32, #tpu.memory_space<vmem>>, vector<128x128xf32>
    %cst_14 = arith.constant dense<0.000000e+00> : vector<8x128xf32>
    %17 = tpu.matmul %15, %16, %cst_14 {dimension_numbers = #tpu.dot_dimension_numbers<[1], [0], [0], [1], [0, 0, 1, 1], [], []>} : vector<8x128xf32>, vector<128x128xf32>, vector<8x128xf32> -> vector<8x128xf32>
    %c0_15 = arith.constant 0 : index
    %c0_16 = arith.constant 0 : index
    %18 = vector.load %arg7[%c0_15, %c0_16] : memref<1x128xf32, #tpu.memory_space<vmem>>, vector<1x128xf32>
    %19 = vector.broadcast %18 : vector<1x128xf32> to vector<8x128xf32>
    %20 = arith.addf %17, %19 : vector<8x128xf32>
    %cst_17 = arith.constant 0.000000e+00 : f32
    %21 = vector.broadcast %cst_17 : f32 to vector<8x128xf32>
    %22 = arith.maximumf %20, %21 : vector<8x128xf32>
    %c0_18 = arith.constant 0 : index
    %c0_19 = arith.constant 0 : index
    %23 = vector.load %arg8[%c0_18, %c0_19] : memref<128x128xf32, #tpu.memory_space<vmem>>, vector<128x128xf32>
    %cst_20 = arith.constant dense<0.000000e+00> : vector<8x128xf32>
    %24 = tpu.matmul %22, %23, %cst_20 {dimension_numbers = #tpu.dot_dimension_numbers<[1], [0], [0], [1], [0, 0, 1, 1], [], []>} : vector<8x128xf32>, vector<128x128xf32>, vector<8x128xf32> -> vector<8x128xf32>
    %c0_21 = arith.constant 0 : index
    %c0_22 = arith.constant 0 : index
    %25 = vector.load %arg9[%c0_21, %c0_22] : memref<1x128xf32, #tpu.memory_space<vmem>>, vector<1x128xf32>
    %26 = vector.broadcast %25 : vector<1x128xf32> to vector<8x128xf32>
    %27 = arith.addf %24, %26 : vector<8x128xf32>
    %c0_23 = arith.constant 0 : index
    %c0_24 = arith.constant 0 : index
    %28 = vector.load %arg10[%c0_23, %c0_24] : memref<8x256xf32, #tpu.memory_space<vmem>>, vector<8x128xf32>
    tpu.vector_store %arg10[%c0_23, %c0_24], %27 {strides = array<i32>} : memref<8x256xf32, #tpu.memory_space<vmem>>, vector<8x128xf32>,
    %c0_25 = arith.constant 0 : index
    %c128 = arith.constant 128 : index
    %29 = vector.load %arg10[%c0_25, %c128] : memref<8x256xf32, #tpu.memory_space<vmem>>, vector<8x128xf32>
    tpu.vector_store %arg10[%c0_25, %c128], %14 {strides = array<i32>} : memref<8x256xf32, #tpu.memory_space<vmem>>, vector<8x128xf32>,
    return
  }
  func.func @transform_0(%arg0: i32) -> (i32, i32) {
    %c0_i32 = arith.constant 0 : i32
    %c0_i32_0 = arith.constant 0 : i32
    return %arg0, %c0_i32 : i32, i32
  }
  func.func @transform_1(%arg0: i32) -> (i32, i32) {
    %c0_i32 = arith.constant 0 : i32
    %c0_i32_0 = arith.constant 0 : i32
    %c0_i32_1 = arith.constant 0 : i32
    return %c0_i32, %c0_i32_0 : i32, i32
  }
  func.func @transform_2(%arg0: i32) -> (i32, i32) {
    %c0_i32 = arith.constant 0 : i32
    %c0_i32_0 = arith.constant 0 : i32
    %c0_i32_1 = arith.constant 0 : i32
    return %c0_i32, %c0_i32_0 : i32, i32
  }
  func.func @transform_3(%arg0: i32) -> (i32, i32) {
    %c0_i32 = arith.constant 0 : i32
    %c0_i32_0 = arith.constant 0 : i32
    %c0_i32_1 = arith.constant 0 : i32
    return %c0_i32, %c0_i32_0 : i32, i32
  }
  func.func @transform_4(%arg0: i32) -> (i32, i32) {
    %c0_i32 = arith.constant 0 : i32
    %c0_i32_0 = arith.constant 0 : i32
    %c0_i32_1 = arith.constant 0 : i32
    return %c0_i32, %c0_i32_0 : i32, i32
  }
  func.func @transform_5(%arg0: i32) -> (i32, i32) {
    %c0_i32 = arith.constant 0 : i32
    %c0_i32_0 = arith.constant 0 : i32
    %c0_i32_1 = arith.constant 0 : i32
    return %c0_i32, %c0_i32_0 : i32, i32
  }
  func.func @transform_6(%arg0: i32) -> (i32, i32) {
    %c0_i32 = arith.constant 0 : i32
    %c0_i32_0 = arith.constant 0 : i32
    %c0_i32_1 = arith.constant 0 : i32
    return %c0_i32, %c0_i32_0 : i32, i32
  }
  func.func @transform_7(%arg0: i32) -> (i32, i32) {
    %c0_i32 = arith.constant 0 : i32
    %c0_i32_0 = arith.constant 0 : i32
    %c0_i32_1 = arith.constant 0 : i32
    return %c0_i32, %c0_i32_0 : i32, i32
  }
  func.func @transform_8(%arg0: i32) -> (i32, i32) {
    %c0_i32 = arith.constant 0 : i32
    %c0_i32_0 = arith.constant 0 : i32
    %c0_i32_1 = arith.constant 0 : i32
    return %c0_i32, %c0_i32_0 : i32, i32
  }
  func.func @transform_9(%arg0: i32) -> (i32, i32) {
    %c0_i32 = arith.constant 0 : i32
    %c0_i32_0 = arith.constant 0 : i32
    return %arg0, %c0_i32 : i32, i32
  }
}

</mosaic_0001>

<bundles_post_ra>
// kernel: cdae_forward.1
= control target key start
LH: loop header
LB: loop body
LE: loop exit
PB: predicated region body
PF: predicated region fallthrough
CT: control target
= control target key end

     0   :  { %14 = vsyncpa [#allocation3], 0  ;;  %s1067_s0 = inlined_call_operand.vmem [shape: f32[8,128], index: 0, kind: input, shape index: {}]   ;;  %s1068_s1 = inlined_call_operand.vmem [shape: f32[128,128], index: 1, kind: input, shape index: {}]   ;;  %s1069_s2 = inlined_call_operand.vmem [shape: f32[1,128], index: 2, kind: input, shape index: {}]   ;;  %s1070_s3 = inlined_call_operand.hbm [shape: f32[128,128], index: 3, kind: input, shape index: {}]   ;;  %s1071_s4 = inlined_call_operand.vmem [shape: f32[1,128], index: 4, kind: input, shape index: {}]   ;;  %s1072_s5 = inlined_call_operand.hbm [shape: f32[128,128], index: 5, kind: input, shape index: {}]   ;;  %s1073_s6 = inlined_call_operand.vmem [shape: f32[1,128], index: 6, kind: input, shape index: {}]   ;;  %s1074_s7 = inlined_call_operand.hbm [shape: f32[128,128], index: 7, kind: input, shape index: {}]   ;;  %s1075_s8 = inlined_call_operand.vmem [shape: f32[1,128], index: 8, kind: input, shape index: {}]   ;;  %s1076_s9 = inlined_call_operand.vmem [shape: f32[8,256], index: 9, kind: output, shape index: {}]  }
   0x1   :  { %15 = vsyncpa [#allocation5], 0  ;;  %s844_s30 = smov [#allocation4]   ;;  %s845_s11 = smov [#allocation2]  }
   0x2   :  { %s41_s10 = sshll.u32 %s844_s30, 4  ;;  %s27_s12 = sshll.u32 %s845_s11, 4  ;;  %s42_s10 = int_to_ptr.vmem [resolvable:$true] %s41_s10  ;;  %s902_s12 = int_to_ptr.vmem [resolvable:$true] %s27_s12 }
   0x3   :  { %s774_s15 = scalar_lea.hbm %s1072_s5, 2048 }
   0x4   :  { %p775_p0 = scmp.ne.s32.totalorder %s1072_s5, %s774_s15  ;;  %p778_p1 = scmp.lt.u32.totalorder %s774_s15, %s1072_s5 }
   0x6   :  { %p780_p2 = pnand %p778_p1, %p775_p0 }
   0x8   :  { %783 = shalt.err (!%p780_p2)
}
   0x9   :  { %s784_s20 = scalar_lea.vmem %s42_s10, 2048  ;;  %p789_p4 = scmp.lt.s32.totalorder %s42_s10, %s42_s10 }
   0xa   :  { %p785_p3 = scmp.ne.s32.totalorder %s42_s10, %s784_s20  ;;  %p790_p5 = scmp.lt.s32.totalorder %s784_s20, %s784_s20 }
   0xc   :  { %p791_p6 = por %p790_p5, %p789_p4 }
   0xe   :  { %p792_p7 = pnand %p791_p6, %p785_p3 }
  0x10   :  { %795 = shalt.err (!%p792_p7)
}
  0x11   :  { %s846_s21 = smov 128   ;;  %s847_s22 = smov 8  }
  0x12   :  { %47 = dma.hbm_to_vmem [thread:$0]  %s1072_s5, 2048, %s42_s10, [#allocation5], %s846_s21, %s846_s21, %s847_s22  }
  0x13   :  { %s796_s27 = scalar_lea.hbm %s1070_s3, 2048 }
  0x14   :  { %p797_p8 = scmp.ne.s32.totalorder %s1070_s3, %s796_s27  ;;  %p800_p9 = scmp.lt.u32.totalorder %s796_s27, %s1070_s3 }
  0x16   :  { %p802_p10 = pnand %p800_p9, %p797_p8 }
  0x18   :  { %805 = shalt.err (!%p802_p10)
}
  0x19   :  { %s806_s13 = scalar_lea.vmem %s902_s12, 2048  ;;  %p811_p12 = scmp.lt.s32.totalorder %s902_s12, %s902_s12 }
  0x1a   :  { %p807_p11 = scmp.ne.s32.totalorder %s902_s12, %s806_s13  ;;  %p812_p13 = scmp.lt.s32.totalorder %s806_s13, %s806_s13 }
  0x1c   :  { %p813_p0 = por %p812_p13, %p811_p12 }
  0x1e   :  { %p814_p1 = pnand %p813_p0, %p807_p11 }
  0x20   :  { %817 = shalt.err (!%p814_p1)
}
  0x21   :  { %33 = dma.hbm_to_vmem [thread:$0]  %s1070_s3, 2048, %s902_s12, [#allocation3], %s846_s21, %s846_s21, %s847_s22  }
  0x22   :  { %s848_s14 = smov [#allocation6]   ;;  %s818_s18 = scalar_lea.hbm %s1074_s7, 2048 }
  0x23   :  { %s55_s15 = sshll.u32 %s848_s14, 4  ;;  %p819_p2 = scmp.ne.s32.totalorder %s1074_s7, %s818_s18  ;;  %s56_s15 = int_to_ptr.vmem [resolvable:$true] %s55_s15 }
  0x24   :  { %p822_p3 = scmp.lt.u32.totalorder %s818_s18, %s1074_s7 }
  0x26   :  { %p824_p4 = pnand %p822_p3, %p819_p2 }
  0x28   :  { %827 = shalt.err (!%p824_p4)
}
  0x29   :  { %s828_s25 = scalar_lea.vmem %s56_s15, 2048  ;;  %p833_p6 = scmp.lt.s32.totalorder %s56_s15, %s56_s15 }
  0x2a   :  { %p829_p5 = scmp.ne.s32.totalorder %s56_s15, %s828_s25  ;;  %p834_p7 = scmp.lt.s32.totalorder %s828_s25, %s828_s25 }
  0x2c   :  { %p835_p8 = por %p834_p7, %p833_p6 }
  0x2e   :  { %p836_p9 = pnand %p835_p8, %p829_p5 }
  0x30   :  { %839 = shalt.err (!%p836_p9)
}
  0x31   :  { %61 = dma.hbm_to_vmem [thread:$0]  %s1074_s7, 2048, %s56_s15, [#allocation5], %s846_s21, %s846_s21, %s847_s22  }
  0x32   :  { %840 = dma.done.wait [#allocation3], 2048  }
  0x33   :  { %841 = vsyncadd [#allocation3], 4294965248 }
  0x34   :  { %842 = dma.done.wait [#allocation5], 4096  }
  0x35   :  { %843 = vsyncadd [#allocation5], 4294963200  ;;  %v849_v0 = vmov 0.0|0.0   ;;  %vm850_vm0 = vmmov 0   ;;  %v851_v1 = vmov 0.0   ;;  %v74_v2 = vld [vmem:[%s1068_s1] sm:$0xff] }
  0x36   :  { %670 = vmatprep.subr.bf16.mxu0 %v849_v0  ;;  %562 = vmatprep.mubr.msk.f32.mxu0 %vm850_vm0, %v851_v1  ;;  %v75_v3 = vld [vmem:[%s1068_s1 + $0x8] sm:$0xff]  ;;  %v76_v4 = vld [vmem:[%s1068_s1 + $0x10] sm:$0xff]  ;;  %v77_v6 = vld [vmem:[%s1068_s1 + $0x18] sm:$0xff] }
  0x37   :  { %694 = vmatprep.subr.bf16.mxu1 %v849_v0  ;;  %597 = vmatprep.mubr.msk.f32.mxu1 %vm850_vm0, %v851_v1  ;;  %v671_v5 = vpack.c.bf16 %v75_v3, %v74_v2  ;;  %v674_v7 = vpack.c.bf16 %v77_v6, %v76_v4  ;;  %v78_v8 = vld [vmem:[%s1068_s1 + $0x20] sm:$0xff]  ;;  %v79_v9 = vld [vmem:[%s1068_s1 + $0x28] sm:$0xff]  ;;  %v170_v12 = vld [vmem:[#allocation2 + $0x10] sm:$0xff] }
  0x38   :  { %v168_v10 = vld [vmem:[#allocation2] sm:$0xff]  ;;  %v169_v11 = vld [vmem:[#allocation2 + $0x8] sm:$0xff]  ;;  %v171_v13 = vld [vmem:[#allocation2 + $0x18] sm:$0xff]  ;;  %v677_v14 = vpack.c.bf16 %v79_v9, %v78_v8 }
  0x39   :  { %672 = vmatpush3.bf16.msra.mxu0 %v671_v5  ;;  %v695_v15 = vpack.c.bf16 %v169_v11, %v168_v10  ;;  %v80_v16 = vld [vmem:[%s1068_s1 + $0x30] sm:$0xff]  ;;  %v81_v17 = vld [vmem:[%s1068_s1 + $0x38] sm:$0xff]  ;;  %v698_v18 = vpack.c.bf16 %v171_v13, %v170_v12  ;;  %v172_v19 = vld [vmem:[#allocation2 + $0x20] sm:$0xff] }
  0x3a   :  { %673 = vmatprep.subr.bf16.mxu0 %v849_v0  ;;  %v173_v20 = vld [vmem:[#allocation2 + $0x28] sm:$0xff]  ;;  %v680_v21 = vpack.c.bf16 %v81_v17, %v80_v16  ;;  %v82_v22 = vld [vmem:[%s1068_s1 + $0x40] sm:$0xff]  ;;  %v174_v25 = vld [vmem:[#allocation2 + $0x30] sm:$0xff] }
  0x3b   :  { %696 = vmatpush3.bf16.msra.mxu1 %v695_v15  ;;  %v83_v23 = vld [vmem:[%s1068_s1 + $0x48] sm:$0xff]  ;;  %v701_v24 = vpack.c.bf16 %v173_v20, %v172_v19  ;;  %v175_v26 = vld [vmem:[#allocation2 + $0x38] sm:$0xff]  ;;  %v84_v28 = vld [vmem:[%s1068_s1 + $0x50] sm:$0xff] }
  0x3c   :  { %697 = vmatprep.subr.bf16.mxu1 %v849_v0  ;;  %v683_v27 = vpack.c.bf16 %v83_v23, %v82_v22  ;;  %v85_v29 = vld [vmem:[%s1068_s1 + $0x58] sm:$0xff]  ;;  %v704_v30 = vpack.c.bf16 %v175_v26, %v174_v25  ;;  %v176_v31 = vld [vmem:[#allocation2 + $0x40] sm:$0xff]  ;;  %v177_v32 = vld [vmem:[#allocation2 + $0x48] sm:$0xff] }
  0x3d   :  { %675 = vmatpush3.bf16.msra.mxu0 %v674_v7  ;;  %v686_v33 = vpack.c.bf16 %v85_v29, %v84_v28  ;;  %v86_v34 = vld [vmem:[%s1068_s1 + $0x60] sm:$0xff]  ;;  %v87_v35 = vld [vmem:[%s1068_s1 + $0x68] sm:$0xff]  ;;  %v707_v36 = vpack.c.bf16 %v177_v32, %v176_v31  ;;  %v178_v37 = vld [vmem:[#allocation2 + $0x50] sm:$0xff] }
  0x3e   :  { %676 = vmatprep.subr.bf16.mxu0 %v849_v0  ;;  %v179_v38 = vld [vmem:[#allocation2 + $0x58] sm:$0xff]  ;;  %v689_v39 = vpack.c.bf16 %v87_v35, %v86_v34  ;;  %v88_v40 = vld [vmem:[%s1068_s1 + $0x70] sm:$0xff]  ;;  %v180_v43 = vld [vmem:[#allocation2 + $0x60] sm:$0xff] }
  0x3f   :  { %699 = vmatpush3.bf16.msra.mxu1 %v698_v18  ;;  %v89_v41 = vld [vmem:[%s1068_s1 + $0x78] sm:$0xff]  ;;  %v710_v42 = vpack.c.bf16 %v179_v38, %v178_v37  ;;  %v181_v44 = vld [vmem:[#allocation2 + $0x68] sm:$0xff]  ;;  %v1024_v47 = vld [vmem:[%s1067_s0] sm:$0xff] }
  0x40   :  { %700 = vmatprep.subr.bf16.mxu1 %v849_v0  ;;  %v692_v45 = vpack.c.bf16 %v89_v41, %v88_v40  ;;  %v713_v46 = vpack.c.bf16 %v181_v44, %v180_v43  ;;  %v182_v48 = vld [vmem:[#allocation2 + $0x70] sm:$0xff]  ;;  %v183_v49 = vld [vmem:[#allocation2 + $0x78] sm:$0xff]  ;;  %v263_v51 = vld [vmem:[#allocation4] sm:$0xff] }
  0x41   :  { %678 = vmatpush3.bf16.msra.mxu0 %v677_v14  ;;  %v716_v50 = vpack.c.bf16 %v183_v49, %v182_v48  ;;  %v264_v52 = vld [vmem:[#allocation4 + $0x8] sm:$0xff]  ;;  %v265_v53 = vld [vmem:[#allocation4 + $0x10] sm:$0xff]  ;;  %v266_v55 = vld [vmem:[#allocation4 + $0x18] sm:$0xff] }
  0x42   :  { %679 = vmatprep.subr.bf16.mxu0 %v849_v0  ;;  %v719_v54 = vpack.c.bf16 %v264_v52, %v263_v51  ;;  %v722_v56 = vpack.c.bf16 %v266_v55, %v265_v53  ;;  %v267_v57 = vld [vmem:[#allocation4 + $0x20] sm:$0xff]  ;;  %v268_v58 = vld [vmem:[#allocation4 + $0x28] sm:$0xff]  ;;  %v269_v60 = vld [vmem:[#allocation4 + $0x30] sm:$0xff] }
  0x43   :  { %702 = vmatpush3.bf16.msra.mxu1 %v701_v24  ;;  %v725_v59 = vpack.c.bf16 %v268_v58, %v267_v57  ;;  %v270_v61 = vld [vmem:[#allocation4 + $0x38] sm:$0xff]  ;;  %v271_v63 = vld [vmem:[#allocation4 + $0x40] sm:$0xff]  ;;  %v272_v2 = vld [vmem:[#allocation4 + $0x48] sm:$0xff] }
  0x44   :  { %703 = vmatprep.subr.bf16.mxu1 %v849_v0  ;;  %v728_v62 = vpack.c.bf16 %v270_v61, %v269_v60  ;;  %v731_v3 = vpack.c.bf16 %v272_v2, %v271_v63  ;;  %v273_v4 = vld [vmem:[#allocation4 + $0x50] sm:$0xff]  ;;  %v274_v5 = vld [vmem:[#allocation4 + $0x58] sm:$0xff]  ;;  %v458_v7 = vld [vmem:[%s1069_s2] ss:$0 sm:$0xff] }
  0x45   :  { %681 = vmatpush3.bf16.msra.mxu0 %v680_v21  ;;  %v734_v6 = vpack.c.bf16 %v274_v5, %v273_v4  ;;  %v275_v12 = vld [vmem:[#allocation4 + $0x60] sm:$0xff]  ;;  %v276_v13 = vld [vmem:[#allocation4 + $0x68] sm:$0xff]  ;;  %v277_v15 = vld [vmem:[#allocation4 + $0x70] sm:$0xff] }
  0x46   :  { %682 = vmatprep.subr.bf16.mxu0 %v849_v0  ;;  %v737_v14 = vpack.c.bf16 %v276_v13, %v275_v12  ;;  %v278_v16 = vld [vmem:[#allocation4 + $0x78] sm:$0xff]  ;;  %v357_v18 = vld [vmem:[#allocation6] sm:$0xff]  ;;  %v358_v19 = vld [vmem:[#allocation6 + $0x8] sm:$0xff] }
  0x47   :  { %705 = vmatpush3.bf16.msra.mxu1 %v704_v30  ;;  %v740_v17 = vpack.c.bf16 %v278_v16, %v277_v15  ;;  %v359_v20 = vld [vmem:[#allocation6 + $0x10] sm:$0xff]  ;;  %v743_v21 = vpack.c.bf16 %v358_v19, %v357_v18  ;;  %v360_v22 = vld [vmem:[#allocation6 + $0x18] sm:$0xff]  ;;  %v362_v24 = vld [vmem:[#allocation6 + $0x28] sm:$0xff] }
  0x48   :  { %706 = vmatprep.subr.bf16.mxu1 %v849_v0  ;;  %v746_v23 = vpack.c.bf16 %v360_v22, %v359_v20  ;;  %v363_v26 = vld [vmem:[#allocation6 + $0x30] sm:$0xff]  ;;  %v365_v29 = vld [vmem:[#allocation6 + $0x40] sm:$0xff]  ;;  %v366_v30 = vld [vmem:[#allocation6 + $0x48] sm:$0xff] }
  0x49   :  { %684 = vmatpush3.bf16.msra.mxu0 %v683_v27  ;;  %v364_v27 = vld [vmem:[#allocation6 + $0x38] sm:$0xff]  ;;  %v755_v31 = vpack.c.bf16 %v366_v30, %v365_v29  ;;  %v367_v32 = vld [vmem:[#allocation6 + $0x50] sm:$0xff]  ;;  %v369_v35 = vld [vmem:[#allocation6 + $0x60] sm:$0xff] }
  0x4a   :  { %685 = vmatprep.subr.bf16.mxu0 %v849_v0  ;;  %v752_v28 = vpack.c.bf16 %v364_v27, %v363_v26  ;;  %v459_v38 = vld [vmem:[%s1071_s4] ss:$0 sm:$0xff]  ;;  %v371_v44 = vld [vmem:[#allocation6 + $0x70] sm:$0xff] }
  0x4b   :  { %708 = vmatpush3.bf16.msra.mxu1 %v707_v36  ;;  %v370_v36 = vld [vmem:[#allocation6 + $0x68] sm:$0xff] }
  0x4c   :  { %709 = vmatprep.subr.bf16.mxu1 %v849_v0  ;;  %v761_v37 = vpack.c.bf16 %v370_v36, %v369_v35 }
  0x4d   :  { %687 = vmatpush3.bf16.msra.mxu0 %v686_v33  ;;  %v368_v33 = vld [vmem:[#allocation6 + $0x58] sm:$0xff] }
  0x4e   :  { %688 = vmatprep.subr.bf16.mxu0 %v849_v0  ;;  %v758_v34 = vpack.c.bf16 %v368_v33, %v367_v32 }
  0x4f   :  { %711 = vmatpush3.bf16.msra.mxu1 %v710_v42 }
  0x50   :  { %712 = vmatprep.subr.bf16.mxu1 %v849_v0 }
  0x51   :  { %690 = vmatpush3.bf16.msra.mxu0 %v689_v39 }
  0x52   :  { %691 = vmatprep.subr.bf16.mxu0 %v849_v0 }
  0x53   :  { %714 = vmatpush3.bf16.msra.mxu1 %v713_v46 }
  0x54   :  { %715 = vmatprep.subr.bf16.mxu1 %v849_v0 }
  0x55   :  { %693 = vmatpush3.bf16.msra.mxu0 %v692_v45  ;;  %v372_v45 = vld [vmem:[#allocation6 + $0x78] sm:$0xff] }
  0x56   :  { %718 = vmatprep.subr.bf16.mxu0 %v849_v0  ;;  %v764_v46 = vpack.c.bf16 %v372_v45, %v371_v44 }
  0x57   :  { %717 = vmatpush3.bf16.msra.mxu1 %v716_v50 }
  0x58   :  { %563 = vmatmul.mubr.f32.vlgmr.msra.gmra.mrb[0].mxu0 %v1024_v47  ;;  %742 = vmatprep.subr.bf16.mxu1 %v849_v0 }
  0x59   :  { %632 = vmatprep.mubr.msk.f32.mxu0 %vm850_vm0, %v851_v1  ;;  %720 = vmatpush3.bf16.msra.mxu0 %v719_v54 }
  0x5a   :  { %721 = vmatprep.subr.bf16.mxu0 %v849_v0 }
  0x5d   :  { %723 = vmatpush3.bf16.msra.mxu0 %v722_v56 }
  0x5e   :  { %724 = vmatprep.subr.bf16.mxu0 %v849_v0 }
  0x61   :  { %726 = vmatpush3.bf16.msra.mxu0 %v725_v59 }
  0x62   :  { %727 = vmatprep.subr.bf16.mxu0 %v849_v0 }
  0x65   :  { %729 = vmatpush3.bf16.msra.mxu0 %v728_v62 }
  0x66   :  { %730 = vmatprep.subr.bf16.mxu0 %v849_v0 }
  0x69   :  { %732 = vmatpush3.bf16.msra.mxu0 %v731_v3 }
  0x6a   :  { %733 = vmatprep.subr.bf16.mxu0 %v849_v0 }
  0x6d   :  { %735 = vmatpush3.bf16.msra.mxu0 %v734_v6 }
  0x6e   :  { %736 = vmatprep.subr.bf16.mxu0 %v849_v0 }
  0x71   :  { %738 = vmatpush3.bf16.msra.mxu0 %v737_v14 }
  0x72   :  { %739 = vmatprep.subr.bf16.mxu0 %v849_v0 }
  0x75   :  { %741 = vmatpush3.bf16.msra.mxu0 %v740_v17 }
 0x12b   :  { %v163_v8 = vpop.f32.mrb[0].mxu0 }
 0x12c   :  { %v164_v9 = vadd.f32 %v458_v7, %v163_v8  ;;  %v564_v10 = vpop.f32.mrb[1].mxu0 }
 0x12e   :  { %v167_v11 = vmax.f32 %v164_v9, 0.0 }
 0x130   :  { %598 = vmatmul.mubr.f32.vlgmr.msra.gmra.mrb[0].mxu1 %v167_v11 }
 0x131   :  { %667 = vmatprep.mubr.msk.f32.mxu1 %vm850_vm0, %v851_v1  ;;  %744 = vmatpush3.bf16.msra.mxu1 %v743_v21  ;;  %v361_v1 = vld [vmem:[#allocation6 + $0x20] sm:$0xff] }
 0x132   :  { %745 = vmatprep.subr.bf16.mxu1 %v849_v0  ;;  %v749_v25 = vpack.c.bf16 %v362_v24, %v361_v1 }
 0x135   :  { %747 = vmatpush3.bf16.msra.mxu1 %v746_v23 }
 0x136   :  { %748 = vmatprep.subr.bf16.mxu1 %v849_v0 }
 0x139   :  { %750 = vmatpush3.bf16.msra.mxu1 %v749_v25 }
 0x13a   :  { %751 = vmatprep.subr.bf16.mxu1 %v849_v0 }
 0x13d   :  { %753 = vmatpush3.bf16.msra.mxu1 %v752_v28 }
 0x13e   :  { %754 = vmatprep.subr.bf16.mxu1 %v849_v0 }
 0x141   :  { %756 = vmatpush3.bf16.msra.mxu1 %v755_v31 }
 0x142   :  { %757 = vmatprep.subr.bf16.mxu1 %v849_v0 }
 0x145   :  { %759 = vmatpush3.bf16.msra.mxu1 %v758_v34 }
 0x146   :  { %760 = vmatprep.subr.bf16.mxu1 %v849_v0 }
 0x149   :  { %762 = vmatpush3.bf16.msra.mxu1 %v761_v37 }
 0x14a   :  { %763 = vmatprep.subr.bf16.mxu1 %v849_v0  ;;  %v460_v0 = vld [vmem:[%s1073_s6] ss:$0 sm:$0xff] }
 0x14d   :  { %765 = vmatpush3.bf16.msra.mxu1 %v764_v46 }
 0x203   :  { %v257_v39 = vpop.f32.mrb[0].mxu1 }
 0x204   :  { %v258_v40 = vadd.f32 %v459_v38, %v257_v39  ;;  %v599_v41 = vpop.f32.mrb[1].mxu1 }
 0x206   :  { %v261_v42 = vmax.f32 %v258_v40, 0.0 }
 0x208   :  { %v262_v43 = vadd.f32 %v261_v42, %v1024_v47  ;;  %451 = vst [vmem:[%s1076_s9 + $0x8] sm:$0xff] %v261_v42  ;;  %v461_v47 = vld [vmem:[%s1075_s8] ss:$0 sm:$0xff] }
 0x20a   :  { %633 = vmatmul.mubr.f32.vlgmr.msra.gmra.mrb[2].mxu0 %v262_v43 }
 0x2dd   :  { %v352_v48 = vpop.f32.mrb[2].mxu0 }
 0x2de   :  { %v353_v49 = vadd.f32 %v460_v0, %v352_v48  ;;  %v634_v50 = vpop.f32.mrb[3].mxu0 }
 0x2e0   :  { %v356_v51 = vmax.f32 %v353_v49, 0.0 }
 0x2e2   :  { %668 = vmatmul.mubr.f32.vlgmr.msra.gmra.mrb[2].mxu1 %v356_v51 }
 0x3b5   :  { %v446_v52 = vpop.f32.mrb[2].mxu1 }
 0x3b6   :  { %v447_v53 = vadd.f32 %v461_v47, %v446_v52  ;;  %v669_v54 = vpop.f32.mrb[3].mxu1 }
 0x3b8   :  { %450 = vst [vmem:[%s1076_s9] sm:$0xff] %v447_v53 }
 0x3b9   :  { %456 = vsyncpa [#allocation3], 1 }
 0x3ba   :  { %457 = vsyncpa [#allocation5], 1 }

</bundles_post_ra>
